<compile_context>
chip_gen: v7x
topology: tpu7x:2x2x1
jax: 0.10.0
libtpu: 0.0.40
codegen_flags: <defaults>
</compile_context>

<pallas_src>
import functools
import math

import jax
import jax.numpy as jnp
from jax.experimental import pallas as pl
from jax.experimental.pallas import tpu as pltpu


# Finite mask value; avoids -inf - (-inf) = NaN in softmax.  Note key-padding +
# causal can stack to -2e30: still finite in f32 (scores are kept f32 on purpose).
_MASK_VALUE = -1e30

_VMEM_LIMIT = 64 * 1024 * 1024  # explicit scoped-VMEM budget for wide-N kernels


def _pick_tile(dim, candidates):
    """Largest candidate tile that divides `dim`; fall back to the full dim.

    TODO(synk): for awkward (prime-ish) dims, pad up to a tile multiple / use a
    cdiv grid with a remainder guard instead of one monolithic block.
    """
    for c in candidates:
        if dim % c == 0:
            return c
    return dim


_ROW_TILES = (512, 256, 128, 64, 32, 16, 8)   # sublane (M) tiles
_LANE_TILES = (512, 256, 128)                 # lane (N/K) tiles


# ----------------------------------------------------------------------------
# Tiled matmul + bias (bf16 MXU operands, f32 accumulator)
# ----------------------------------------------------------------------------

def _linear_kernel(x_ref, w_ref, b_ref, o_ref, acc_ref):
    k = pl.program_id(2)

    @pl.when(k == 0)
    def _():
        acc_ref[...] = jnp.zeros_like(acc_ref)

    acc_ref[...] += jnp.dot(x_ref[...].astype(jnp.bfloat16),
                            w_ref[...].astype(jnp.bfloat16),
                            preferred_element_type=jnp.float32)

    @pl.when(k == pl.num_programs(2) - 1)
    def _():
        o_ref[...] = (acc_ref[...] + b_ref[...].astype(jnp.float32)).astype(o_ref.dtype)


def linear(x, w, b):
    M, K = x.shape
    N = w.shape[1]
    tm = _pick_tile(M, _ROW_TILES)
    tn = _pick_tile(N, _LANE_TILES)
    tk = _pick_tile(K, _LANE_TILES)
    return pl.pallas_call(
        _linear_kernel,
        out_shape=jax.ShapeDtypeStruct((M, N), x.dtype),
        grid=(M // tm, N // tn, K // tk),
        in_specs=[
            pl.BlockSpec((tm, tk), lambda i, j, k: (i, k)),
            pl.BlockSpec((tk, tn), lambda i, j, k: (k, j)),
            pl.BlockSpec((1, tn), lambda i, j, k: (0, j)),
        ],
        out_specs=pl.BlockSpec((tm, tn), lambda i, j, k: (i, j)),
        scratch_shapes=[pltpu.VMEM((tm, tn), jnp.float32)],
        compiler_params=pltpu.CompilerParams(
            dimension_semantics=("parallel", "parallel", "arbitrary")),
    )(x, w, b.reshape(1, N))


# ----------------------------------------------------------------------------
# Tiled matmul + bias + residual + LayerNorm (out-projection epilogue fusion)
# N (= d_model) is untiled so the LayerNorm sees the full feature row.
# ----------------------------------------------------------------------------

def _linear_add_ln_kernel(x_ref, w_ref, b_ref, r_ref, g_ref, beta_ref, o_ref, acc_ref):
    k = pl.program_id(1)

    @pl.when(k == 0)
    def _():
        acc_ref[...] = jnp.zeros_like(acc_ref)

    acc_ref[...] += jnp.dot(x_ref[...].astype(jnp.bfloat16),
                            w_ref[...].astype(jnp.bfloat16),
                            preferred_element_type=jnp.float32)

    @pl.when(k == pl.num_programs(1) - 1)
    def _():
        h = (acc_ref[...]
             + b_ref[...].astype(jnp.float32)
             + r_ref[...].astype(jnp.float32))
        mu = jnp.mean(h, axis=-1, keepdims=True)
        var = jnp.mean((h - mu) ** 2, axis=-1, keepdims=True)
        o_ref[...] = ((h - mu) * jax.lax.rsqrt(var + 1e-5)
                      * g_ref[...].astype(jnp.float32)
                      + beta_ref[...].astype(jnp.float32)).astype(o_ref.dtype)


def linear_add_ln(x, w, b, residual, gamma, beta):
    M, K = x.shape
    N = w.shape[1]
    # N is untiled, so cap tm / tk at 256 (working set = 2x(tk,N) weights +
    # (tm,N) f32 acc + 2x(tm,N) residual + 2x(tm,N) out) — fits v7x's 64 MiB.
    tm = _pick_tile(M, (256, 128, 64, 32, 16, 8))
    tk = _pick_tile(K, (256, 128))
    return pl.pallas_call(
        _linear_add_ln_kernel,
        out_shape=jax.ShapeDtypeStruct((M, N), x.dtype),
        grid=(M // tm, K // tk),
        in_specs=[
            pl.BlockSpec((tm, tk), lambda i, k: (i, k)),
            pl.BlockSpec((tk, N), lambda i, k: (k, 0)),
            pl.BlockSpec((1, N), lambda i, k: (0, 0)),
            pl.BlockSpec((tm, N), lambda i, k: (i, 0)),
            pl.BlockSpec((1, N), lambda i, k: (0, 0)),
            pl.BlockSpec((1, N), lambda i, k: (0, 0)),
        ],
        out_specs=pl.BlockSpec((tm, N), lambda i, k: (i, 0)),
        scratch_shapes=[pltpu.VMEM((tm, N), jnp.float32)],
        compiler_params=pltpu.CompilerParams(
            dimension_semantics=("parallel", "arbitrary"),
            vmem_limit_bytes=_VMEM_LIMIT),
    )(x, w, b.reshape(1, N), residual, gamma.reshape(1, N), beta.reshape(1, N))


# ----------------------------------------------------------------------------
# FFN sublayer, F-tiled: sum_f relu(x @ w1[:,f] + b1[f]) @ w2[f,:] into an f32
# [tm, D] accumulator; residual-add + LayerNorm fused into the finalize.
# ----------------------------------------------------------------------------

def _ffn_add_ln_kernel(x_ref, w1_ref, b1_ref, w2_ref, b2_ref,
                       r_ref, g_ref, beta_ref, o_ref, acc_ref):
    f = pl.program_id(1)

    @pl.when(f == 0)
    def _():
        acc_ref[...] = jnp.zeros_like(acc_ref)

    h = jnp.dot(x_ref[...].astype(jnp.bfloat16), w1_ref[...].astype(jnp.bfloat16),
                preferred_element_type=jnp.float32) + b1_ref[...].astype(jnp.float32)
    h = jnp.maximum(h, 0.0)
    acc_ref[...] += jnp.dot(h.astype(jnp.bfloat16), w2_ref[...].astype(jnp.bfloat16),
                            preferred_element_type=jnp.float32)

    @pl.when(f == pl.num_programs(1) - 1)
    def _():
        y = (acc_ref[...]
             + b2_ref[...].astype(jnp.float32)
             + r_ref[...].astype(jnp.float32))
        mu = jnp.mean(y, axis=-1, keepdims=True)
        var = jnp.mean((y - mu) ** 2, axis=-1, keepdims=True)
        o_ref[...] = ((y - mu) * jax.lax.rsqrt(var + 1e-5)
                      * g_ref[...].astype(jnp.float32)
                      + beta_ref[...].astype(jnp.float32)).astype(o_ref.dtype)


def ffn_add_ln(x, w1, b1, w2, b2, residual, gamma, beta):
    M, D = x.shape
    F = w1.shape[1]
    tm = _pick_tile(M, (256, 128, 64, 32, 16, 8))
    tf = _pick_tile(F, (512, 256, 128, 64, 32, 16, 8))
    return pl.pallas_call(
        _ffn_add_ln_kernel,
        out_shape=jax.ShapeDtypeStruct((M, D), x.dtype),
        grid=(M // tm, F // tf),
        in_specs=[
            pl.BlockSpec((tm, D), lambda i, f: (i, 0)),
            pl.BlockSpec((D, tf), lambda i, f: (0, f)),
            pl.BlockSpec((1, tf), lambda i, f: (0, f)),
            pl.BlockSpec((tf, D), lambda i, f: (f, 0)),
            pl.BlockSpec((1, D), lambda i, f: (0, 0)),
            pl.BlockSpec((tm, D), lambda i, f: (i, 0)),
            pl.BlockSpec((1, D), lambda i, f: (0, 0)),
            pl.BlockSpec((1, D), lambda i, f: (0, 0)),
        ],
        out_specs=pl.BlockSpec((tm, D), lambda i, f: (i, 0)),
        scratch_shapes=[pltpu.VMEM((tm, D), jnp.float32)],
        compiler_params=pltpu.CompilerParams(
            dimension_semantics=("parallel", "arbitrary"),
            vmem_limit_bytes=_VMEM_LIMIT),
    )(x, w1, b1.reshape(1, F), w2, b2.reshape(1, D),
      residual, gamma.reshape(1, D), beta.reshape(1, D))


# ----------------------------------------------------------------------------
# Final LayerNorm
# ----------------------------------------------------------------------------

def _ln_kernel(x_ref, g_ref, b_ref, o_ref):
    h = x_ref[...].astype(jnp.float32)
    mu = jnp.mean(h, axis=-1, keepdims=True)
    var = jnp.mean((h - mu) ** 2, axis=-1, keepdims=True)
    o_ref[...] = ((h - mu) * jax.lax.rsqrt(var + 1e-5)
                  * g_ref[...].astype(jnp.float32)
                  + b_ref[...].astype(jnp.float32)).astype(o_ref.dtype)


def layernorm(x, gamma, beta):
    M, D = x.shape
    tm = _pick_tile(M, _ROW_TILES)
    return pl.pallas_call(
        _ln_kernel,
        out_shape=jax.ShapeDtypeStruct((M, D), x.dtype),
        grid=(M // tm,),
        in_specs=[
            pl.BlockSpec((tm, D), lambda i: (i, 0)),
            pl.BlockSpec((1, D), lambda i: (0, 0)),
            pl.BlockSpec((1, D), lambda i: (0, 0)),
        ],
        out_specs=pl.BlockSpec((tm, D), lambda i: (i, 0)),
        compiler_params=pltpu.CompilerParams(dimension_semantics=("parallel",)),
    )(x, gamma.reshape(1, D), beta.reshape(1, D))


# ----------------------------------------------------------------------------
# Multi-head attention core.
#   grid = (B, T // tq); q rows tiled by the grid, K/V rows loaded full.
#   q comes from a (possibly fused) [*, QW] tensor at lane offset 0; k/v from a
#   (possibly fused) [*, KW] tensor at static lane offsets k_off / v_off — the
#   fused QKV / KV projections are passed in directly (no wrapper HBM slices).
#   Per-head outputs are stored straight into o_ref; scale and the combined
#   (key-padding + causal) bias are computed once per grid step.
# ----------------------------------------------------------------------------

def _mha_kernel(q_ref, kv_ref, *rest, nhead, scale, causal, has_bias,
                d_model, k_off, v_off, tq):
    if has_bias:
        bias_ref, o_ref = rest
    else:
        (o_ref,) = rest

    D = d_model
    q = q_ref[0, :, 0:D]                        # [tq, D]
    k = kv_ref[0, :, k_off:k_off + D]           # [S, D]
    v = kv_ref[0, :, v_off:v_off + D]           # [S, D]

    T = q.shape[0]
    S = k.shape[0]
    hd = D // nhead

    # Fold the softmax scale into q once; feed the MXU bf16, accumulate f32.
    qb = (q.astype(jnp.float32) * scale).astype(jnp.bfloat16)
    kb = k.astype(jnp.bfloat16)
    vb = v.astype(jnp.bfloat16)

    # Combined additive bias, built once and shared by every head.
    bias = bias_ref[0].astype(jnp.float32) if has_bias else None   # [1, S]
    if causal:
        row0 = pl.program_id(1) * tq
        row = jax.lax.broadcasted_iota(jnp.int32, (T, S), 0) + row0
        col = jax.lax.broadcasted_iota(jnp.int32, (T, S), 1)
        cb = jnp.where(col <= row, 0.0, _MASK_VALUE).astype(jnp.float32)
        bias = cb if bias is None else cb + bias

    for h in range(nhead):  # static unrolled loop over heads (keeps shapes 2-D)
        qh = qb[:, h * hd:(h + 1) * hd]
        kh = kb[:, h * hd:(h + 1) * hd]
        vh = vb[:, h * hd:(h + 1) * hd]
        s = jax.lax.dot_general(qh, kh, (((1,), (1,)), ((), ())),
                                preferred_element_type=jnp.float32)
        if bias is not None:
            s = s + bias
        m = jnp.max(s, axis=-1, keepdims=True)
        p = jnp.exp(s - m)
        denom = jnp.sum(p, axis=-1, keepdims=True)
        # EUP reciprocal: approx (use exact divide for strict PyTorch parity tests).
        p = p * pl.reciprocal(denom, approx=True)
        oh = jnp.dot(p.astype(jnp.bfloat16), vh, preferred_element_type=jnp.float32)
        o_ref[0, :, h * hd:(h + 1) * hd] = oh.astype(o_ref.dtype)


def attention(q_arr, kv_arr, bias, *, d_model, nhead, scale, causal, k_off, v_off):
    # q_arr:  [B, T, QW]  (QW = 3*D for fused self-attn QKV, D for cross-attn Q)
    # kv_arr: [B, S, KW]  (KW = 3*D for fused self-attn QKV, 2*D for fused cross KV)
    # bias:   [B, 1, S] additive key-padding bias, or None (input skipped entirely)
    B, T, QW = q_arr.shape
    S, KW = kv_arr.shape[1], kv_arr.shape[2]
    tq = _pick_tile(T, (256, 128, 64, 32, 16, 8))
    has_bias = bias is not None

    kern = functools.partial(
        _mha_kernel, nhead=nhead, scale=float(scale), causal=causal,
        has_bias=has_bias, d_model=d_model, k_off=k_off, v_off=v_off, tq=tq)

    in_specs = [
        pl.BlockSpec((1, tq, QW), lambda b, qi: (b, qi, 0)),
        pl.BlockSpec((1, S, KW), lambda b, qi: (b, 0, 0)),
    ]
    args = [q_arr, kv_arr]
    if has_bias:
        in_specs.append(pl.BlockSpec((1, 1, S), lambda b, qi: (b, 0, 0)))
        args.append(bias)

    return pl.pallas_call(
        kern,
        out_shape=jax.ShapeDtypeStruct((B, T, d_model), q_arr.dtype),
        grid=(B, T // tq),
        in_specs=in_specs,
        out_specs=pl.BlockSpec((1, tq, d_model), lambda b, qi: (b, qi, 0)),
        compiler_params=pltpu.CompilerParams(
            dimension_semantics=("parallel", "parallel")),
    )(*args)


# ----------------------------------------------------------------------------
# Transformer decoder glue (plain JAX around the Pallas kernels)
# ----------------------------------------------------------------------------

def _self_attention_block(x, p, bias, nhead):
    B, T, D = x.shape
    x_flat = x.reshape(B * T, D)
    # Fused QKV projection; the [B, T, 3D] result is fed straight into attention.
    qkv = linear(x_flat, p["sa_wqkv"], p["sa_bqkv"]).reshape(B, T, 3 * D)
    o = attention(qkv, qkv, bias, d_model=D, nhead=nhead,
                  scale=1.0 / math.sqrt(D // nhead), causal=True,
                  k_off=D, v_off=2 * D)
    # out-projection + residual-add + LayerNorm fused in one kernel
    y = linear_add_ln(o.reshape(B * T, D), p["sa_wo"], p["sa_bo"],
                      x_flat, p["ln1_g"], p["ln1_b"])
    return y.reshape(B, T, D)


def _cross_attention_block(x, memory, p, bias, nhead):
    B, T, D = x.shape
    S = memory.shape[1]
    x_flat = x.reshape(B * T, D)
    q = linear(x_flat, p["ca_wq"], p["ca_bq"]).reshape(B, T, D)
    # Fused KV projection; the [B, S, 2D] result is fed straight into attention.
    kv = linear(memory.reshape(B * S, D), p["ca_wkv"], p["ca_bkv"]).reshape(B, S, 2 * D)
    o = attention(q, kv, bias, d_model=D, nhead=nhead,
                  scale=1.0 / math.sqrt(D // nhead), causal=False,
                  k_off=0, v_off=D)
    y = linear_add_ln(o.reshape(B * T, D), p["ca_wo"], p["ca_bo"],
                      x_flat, p["ln2_g"], p["ln2_b"])
    return y.reshape(B, T, D)


def _ffn_block(x, p):
    B, T, D = x.shape
    x_flat = x.reshape(B * T, D)
    y = ffn_add_ln(x_flat, p["w1"], p["b1"], p["w2"], p["b2"],
                   x_flat, p["ln3_g"], p["ln3_b"])
    return y.reshape(B, T, D)


def _decoder_layer(x, memory, p, self_bias, mem_bias, nhead):
    x = _self_attention_block(x, p, self_bias, nhead)
    x = _cross_attention_block(x, memory, p, mem_bias, nhead)
    x = _ffn_block(x, p)
    return x


def transformer_decoder(tgt, memory, params, memory_padding_mask=None,
                        tgt_padding_mask=None, nhead=4):
    """Forward pass of the PyTorch TransformerDecoder module (eval semantics).

    tgt:    [B, tgt_len, d_model]
    memory: [B, src_len, d_model]
    memory_padding_mask: bool [B, src_len], True = padded key position (or None)
    tgt_padding_mask:    bool [B, tgt_len] (or None)
    returns last_hidden_state [B, tgt_len, d_model]
    """
    B, T, D = tgt.shape

    # Tiny additive key-padding biases ([B,1,len]) — only built when a mask exists;
    # the causal mask is generated inside the attention kernel via iota.
    self_bias = None
    if tgt_padding_mask is not None:
        self_bias = jnp.where(tgt_padding_mask[:, None, :],
                              _MASK_VALUE, 0.0).astype(jnp.float32)
    mem_bias = None
    if memory_padding_mask is not None:
        mem_bias = jnp.where(memory_padding_mask[:, None, :],
                             _MASK_VALUE, 0.0).astype(jnp.float32)

    x = tgt
    for layer_p in params["layers"]:
        x = _decoder_layer(x, memory, layer_p, self_bias, mem_bias, nhead)

    # final decoder_norm
    x = layernorm(x.reshape(B * T, D), params["final_g"],
                  params["final_b"]).reshape(B, T, D)
    return x


# ----------------------------------------------------------------------------
# Deterministic parameter init (synthetic; shapes follow nn.TransformerDecoderLayer,
# with QKV / KV projections stored pre-fused).  Matmul weights are stored bf16
# (MXU-native, halves weight HBM traffic); biases / LN params stay f32.
# ----------------------------------------------------------------------------

def init_params(key, d_model, nhead, num_layers, dim_ff):
    def dense(k, fan_in, fan_out):
        w = jax.random.normal(k, (fan_in, fan_out), jnp.float32) / jnp.sqrt(
            jnp.float32(fan_in))
        return w.astype(jnp.bfloat16)

    layers = []
    for l in range(num_layers):
        ks = jax.random.split(jax.random.fold_in(key, l), 7)
        layers.append(dict(
            # self-attention: fused QKV projection [D, 3D]
            sa_wqkv=dense(ks[0], d_model, 3 * d_model),
            sa_bqkv=jnp.zeros((3 * d_model,), jnp.float32),
            sa_wo=dense(ks[1], d_model, d_model),
            sa_bo=jnp.zeros((d_model,), jnp.float32),
            # cross-attention: separate Q, fused KV [D, 2D]
            ca_wq=dense(ks[2], d_model, d_model),
            ca_bq=jnp.zeros((d_model,), jnp.float32),
            ca_wkv=dense(ks[3], d_model, 2 * d_model),
            ca_bkv=jnp.zeros((2 * d_model,), jnp.float32),
            ca_wo=dense(ks[4], d_model, d_model),
            ca_bo=jnp.zeros((d_model,), jnp.float32),
            # feed-forward
            w1=dense(ks[5], d_model, dim_ff), b1=jnp.zeros((dim_ff,), jnp.float32),
            w2=dense(ks[6], dim_ff, d_model), b2=jnp.zeros((d_model,), jnp.float32),
            # layer norms
            ln1_g=jnp.ones((d_model,), jnp.float32), ln1_b=jnp.zeros((d_model,), jnp.float32),
            ln2_g=jnp.ones((d_model,), jnp.float32), ln2_b=jnp.zeros((d_model,), jnp.float32),
            ln3_g=jnp.ones((d_model,), jnp.float32), ln3_b=jnp.zeros((d_model,), jnp.float32),
        ))
    return dict(
        layers=layers,
        final_g=jnp.ones((d_model,), jnp.float32),
        final_b=jnp.zeros((d_model,), jnp.float32),
    )


# ----------------------------------------------------------------------------
# Main
# ----------------------------------------------------------------------------

if __name__ == "__main__":
    # Small-but-consistent shapes: batch=2, tgt_len=8, src_len=8,
    # d_model=32, nhead=4, num_decoder_layers=2, dim_feedforward=64.
    # (At these tiny, lane-sparse shapes the model is launch-overhead-bound —
    #  realistic d_model/head_dim should be multiples of 128 for full perf.)
    B, T, S, D, H, F, L = 2, 8, 8, 32, 4, 64, 2

    key = jax.random.PRNGKey(0)
    k_tgt, k_mem, k_par = jax.random.split(key, 3)

    tgt = jax.random.normal(k_tgt, (B, T, D), jnp.float32)
    memory = jax.random.normal(k_mem, (B, S, D), jnp.float32)
    # Pad the last 2 source positions of every batch element.
    memory_padding_mask = jnp.zeros((B, S), jnp.bool_).at[:, S - 2:].set(True)

    params = init_params(k_par, D, H, L, F)

    out = transformer_decoder(
        tgt, memory, params,
        memory_padding_mask=memory_padding_mask,
        tgt_padding_mask=None,
        nhead=H,
    )
    out = jax.block_until_ready(out)

    assert out.shape == (B, T, D), out.shape
    assert bool(jnp.all(jnp.isfinite(out)))
    print("KERNEL_OK")
</pallas_src>

<mosaic_0001>
module attributes {stable_mosaic.version = 11 : i64} {
  func.func @_linear_kernel(%arg0: i32, %arg1: i32, %arg2: i32, %arg3: memref<16x32xf32, #tpu.memory_space<vmem>>, %arg4: memref<32x96xbf16, #tpu.memory_space<vmem>>, %arg5: memref<1x96xf32, #tpu.memory_space<vmem>>, %arg6: memref<16x96xf32, #tpu.memory_space<vmem>>, %arg7: memref<16x96xf32, #tpu.memory_space<vmem>>) attributes {dimension_semantics = [#tpu.dimension_semantics<parallel>, #tpu.dimension_semantics<parallel>, #tpu.dimension_semantics<arbitrary>], iteration_bounds = array<i64: 1, 1, 1>, scalar_prefetch = 0 : i64, scratch_operands = 1 : i64, tpu.core_type = #tpu.core_type<tc>, window_params = [{transform_indices = @transform_0, window_bounds = array<i64: 16, 32>}, {transform_indices = @transform_1, window_bounds = array<i64: 32, 96>}, {transform_indices = @transform_2, window_bounds = array<i64: 1, 96>}, {transform_indices = @transform_3, window_bounds = array<i64: 16, 96>}]} {
    %c0_i32 = arith.constant 0 : i32
    %0 = arith.cmpi eq, %arg2, %c0_i32 : i32
    %1 = arith.extui %0 : i1 to i32
    %c0_i32_0 = arith.constant 0 : i32
    %2 = arith.cmpi ne, %1, %c0_i32_0 : i32
    scf.if %2 {
      %cst_10 = arith.constant 0.000000e+00 : f32
      %13 = vector.broadcast %cst_10 : f32 to vector<16x96xf32>
      %c0_11 = arith.constant 0 : index
      %c0_12 = arith.constant 0 : index
      %14 = vector.load %arg7[%c0_11, %c0_12] : memref<16x96xf32, #tpu.memory_space<vmem>>, vector<16x96xf32>
      tpu.vector_store %arg7[%c0_11, %c0_12], %13 {strides = array<i32>} : memref<16x96xf32, #tpu.memory_space<vmem>>, vector<16x96xf32>,
    } else {
    }
    %c0 = arith.constant 0 : index
    %c0_1 = arith.constant 0 : index
    %3 = vector.load %arg7[%c0, %c0_1] : memref<16x96xf32, #tpu.memory_space<vmem>>, vector<16x96xf32>
    %c0_2 = arith.constant 0 : index
    %c0_3 = arith.constant 0 : index
    %4 = vector.load %arg3[%c0_2, %c0_3] : memref<16x32xf32, #tpu.memory_space<vmem>>, vector<16x32xf32>
    %5 = arith.truncf %4 : vector<16x32xf32> to vector<16x32xbf16>
    %c0_4 = arith.constant 0 : index
    %c0_5 = arith.constant 0 : index
    %6 = vector.load %arg4[%c0_4, %c0_5] : memref<32x96xbf16, #tpu.memory_space<vmem>>, vector<32x96xbf16>
    %cst = arith.constant dense<0.000000e+00> : vector<16x96xf32>
    %7 = tpu.matmul %5, %6, %cst {dimension_numbers = #tpu.dot_dimension_numbers<[1], [0], [0], [1], [0, 0, 1, 1], [], []>} : vector<16x32xbf16>, vector<32x96xbf16>, vector<16x96xf32> -> vector<16x96xf32>
    %8 = arith.addf %3, %7 : vector<16x96xf32>
    %c0_6 = arith.constant 0 : index
    %c0_7 = arith.constant 0 : index
    %9 = vector.load %arg7[%c0_6, %c0_7] : memref<16x96xf32, #tpu.memory_space<vmem>>, vector<16x96xf32>
    tpu.vector_store %arg7[%c0_6, %c0_7], %8 {strides = array<i32>} : memref<16x96xf32, #tpu.memory_space<vmem>>, vector<16x96xf32>,
    %c0_i32_8 = arith.constant 0 : i32
    %10 = arith.cmpi eq, %arg2, %c0_i32_8 : i32
    %11 = arith.extui %10 : i1 to i32
    %c0_i32_9 = arith.constant 0 : i32
    %12 = arith.cmpi ne, %11, %c0_i32_9 : i32
    scf.if %12 {
      %c0_10 = arith.constant 0 : index
      %c0_11 = arith.constant 0 : index
      %13 = vector.load %arg7[%c0_10, %c0_11] : memref<16x96xf32, #tpu.memory_space<vmem>>, vector<16x96xf32>
      %c0_12 = arith.constant 0 : index
      %c0_13 = arith.constant 0 : index
      %14 = vector.load %arg5[%c0_12, %c0_13] : memref<1x96xf32, #tpu.memory_space<vmem>>, vector<1x96xf32>
      %15 = vector.broadcast %14 : vector<1x96xf32> to vector<16x96xf32>
      %16 = arith.addf %13, %15 : vector<16x96xf32>
      %c0_14 = arith.constant 0 : index
      %c0_15 = arith.constant 0 : index
      %17 = vector.load %arg6[%c0_14, %c0_15] : memref<16x96xf32, #tpu.memory_space<vmem>>, vector<16x96xf32>
      tpu.vector_store %arg6[%c0_14, %c0_15], %16 {strides = array<i32>} : memref<16x96xf32, #tpu.memory_space<vmem>>, vector<16x96xf32>,
    } else {
    }
    return
  }
  func.func @transform_0(%arg0: i32, %arg1: i32, %arg2: i32) -> (i32, i32) {
    %c0_i32 = arith.constant 0 : i32
    return %arg0, %arg2 : i32, i32
  }
  func.func @transform_1(%arg0: i32, %arg1: i32, %arg2: i32) -> (i32, i32) {
    %c0_i32 = arith.constant 0 : i32
    return %arg2, %arg1 : i32, i32
  }
  func.func @transform_2(%arg0: i32, %arg1: i32, %arg2: i32) -> (i32, i32) {
    %c0_i32 = arith.constant 0 : i32
    %c0_i32_0 = arith.constant 0 : i32
    return %c0_i32, %arg1 : i32, i32
  }
  func.func @transform_3(%arg0: i32, %arg1: i32, %arg2: i32) -> (i32, i32) {
    %c0_i32 = arith.constant 0 : i32
    return %arg0, %arg1 : i32, i32
  }
}

</mosaic_0001>

<bundles_post_ra>
// kernel: tpu_custom_call.1
= control target key start
LH: loop header
LB: loop body
LE: loop exit
PB: predicated region body
PF: predicated region fallthrough
CT: control target
= control target key end

     0   :  { %8 = vsyncpa [#allocation4], 0  ;;  %s334_s0 = inlined_call_operand.hbm [shape: f32[16,32], index: 0, kind: input, shape index: {}]   ;;  %s335_s1 = inlined_call_operand.hbm [shape: bf16[32,96], index: 1, kind: input, shape index: {}]   ;;  %s336_s2 = inlined_call_operand.vmem [shape: f32[1,96], index: 2, kind: input, shape index: {}]   ;;  %s337_s3 = inlined_call_operand.hbm [shape: f32[16,96], index: 3, kind: output, shape index: {}]  }
   0x1   :  { %9 = vsyncpa [#allocation7], 0 }
   0x2   :  { %10 = vsyncpa [#allocation5], 0  ;;  %s254_s12 = smov [#allocation3]   ;;  %s182_s16 = scalar_lea.hbm %s334_s0, 256 }
   0x3   :  { %s16_s13 = sshll.u32 %s254_s12, 4  ;;  %p183_p0 = scmp.ne.s32.totalorder %s334_s0, %s182_s16  ;;  %s17_s13 = int_to_ptr.vmem [resolvable:$true] %s16_s13 }
   0x4   :  { %p186_p1 = scmp.lt.u32.totalorder %s182_s16, %s334_s0 }
   0x6   :  { %p188_p2 = pnand %p186_p1, %p183_p0 }
   0x8   :  { %191 = shalt.err (!%p188_p2)
}
   0x9   :  { %s192_s21 = scalar_lea.vmem %s17_s13, 256  ;;  %p197_p4 = scmp.lt.s32.totalorder %s17_s13, %s17_s13 }
   0xa   :  { %p193_p3 = scmp.ne.s32.totalorder %s17_s13, %s192_s21  ;;  %p198_p5 = scmp.lt.s32.totalorder %s192_s21, %s192_s21 }
   0xc   :  { %p199_p6 = por %p198_p5, %p197_p4 }
   0xe   :  { %p200_p7 = pnand %p199_p6, %p193_p3 }
  0x10   :  { %203 = shalt.err (!%p200_p7)
}
  0x11   :  { %s255_s22 = smov 128   ;;  %s256_s23 = smov 8  }
  0x12   :  { %22 = dma.hbm_to_vmem [thread:$0]  %s334_s0, 256, %s17_s13, [#allocation4], %s255_s22, %s255_s22, %s256_s23  }
  0x13   :  { %s257_s26 = smov [#allocation6]   ;;  %s204_s30 = scalar_lea.hbm %s335_s1, 256 }
  0x14   :  { %s28_s27 = sshll.u32 %s257_s26, 4  ;;  %p205_p8 = scmp.ne.s32.totalorder %s335_s1, %s204_s30  ;;  %s29_s27 = int_to_ptr.vmem [resolvable:$true] %s28_s27 }
  0x15   :  { %p208_p9 = scmp.lt.u32.totalorder %s204_s30, %s335_s1 }
  0x17   :  { %p210_p10 = pnand %p208_p9, %p205_p8 }
  0x19   :  { %213 = shalt.err (!%p210_p10)
}
  0x1a   :  { %s214_s8 = scalar_lea.vmem %s29_s27, 256  ;;  %p219_p12 = scmp.lt.s32.totalorder %s29_s27, %s29_s27 }
  0x1b   :  { %p215_p11 = scmp.ne.s32.totalorder %s29_s27, %s214_s8  ;;  %p220_p13 = scmp.lt.s32.totalorder %s214_s8, %s214_s8 }
  0x1d   :  { %p221_p0 = por %p220_p13, %p219_p12 }
  0x1f   :  { %p222_p1 = pnand %p221_p0, %p215_p11 }
  0x21   :  { %225 = shalt.err (!%p222_p1)
}
  0x22   :  { %s258_s0 = smov 64   ;;  %s259_s9 = smov 4  }
  0x23   :  { %34 = dma.hbm_to_vmem [thread:$0]  %s335_s1, 256, %s29_s27, [#allocation7], %s258_s0, %s258_s0, %s259_s9  }
  0x24   :  { %248 = dma.done.wait [#allocation4], 256  }
  0x25   :  { %249 = vsyncadd [#allocation4], 4294967040 }
  0x26   :  { %250 = dma.done.wait [#allocation7], 256  }
  0x27   :  { %251 = vsyncadd [#allocation7], 4294967040  ;;  %vm48_vm0 = vcmask 785408   ;;  %v260_v0 = vmov 0.0   ;;  %vm261_vm1 = vmmov 0   ;;  %v180_v1 = vld [vmem:[#allocation6] sm:$0xff]  }
  0x28   :  { %49 = vst.msk [vmem:[#allocation2] sm:$0xff] %vm48_vm0, %v260_v0  ;;  %50 = vst.msk [vmem:[#allocation2 + $0x8] sm:$0xff] %vm48_vm0, %v260_v0  ;;  %163 = vmatprep.subr.bf16.mxu0 %v260_v0  ;;  %167 = vmatprep.mubr.msk.bf16.mxu0 %vm261_vm1, %v260_v0  ;;  %v181_v2 = vld [vmem:[#allocation6 + $0x8] sm:$0xff]   ;;  %v53_v3 = vld [vmem:[#allocation3] sm:$0xff]  ;;  %vm72_vm2 = vcmask 261120   ;;  %s262_s13 = smov [#allocation8]  }
  0x29   :  { %164 = vmatpush3.bf16.msra.mxu0 %v180_v1  ;;  %v54_v4 = vld [vmem:[#allocation3 + $0x8] sm:$0xff]  ;;  %v159_v14 = vld [vmem:[%s336_s2] ss:$0 sm:$0xff]  ;;  %s143_s14 = sshll.u32 %s262_s13, 4  ;;  %s144_s14 = int_to_ptr.vmem [resolvable:$true] %s143_s14 }
  0x2a   :  { %165 = vmatprep.subr.bf16.mxu0 %v260_v0  ;;  %v55_v5 = vpack.c.bf16 %v54_v4, %v53_v3  ;;  %s226_s15 = scalar_lea.vmem %s144_s14, 256  ;;  %p231_p3 = scmp.lt.s32.totalorder %s144_s14, %s144_s14 }
  0x2b   :  { %p227_p2 = scmp.ne.s32.totalorder %s144_s14, %s226_s15  ;;  %p232_p4 = scmp.lt.s32.totalorder %s226_s15, %s226_s15 }
  0x2d   :  { %166 = vmatpush3.bf16.msra.mxu0 %v181_v2  ;;  %p233_p5 = por %p232_p4, %p231_p3 }
  0x2f   :  { %v51_v6 = vld [vmem:[#allocation2] sm:$0xff]  ;;  %v52_v8 = vld [vmem:[#allocation2 + $0x8] sm:$0xff]  ;;  %p234_p6 = pnand %p233_p5, %p227_p2 }
  0x30   :  { %168 = vmatmul.mubr.msk.bf16.vlgmr.msra.gmra.mrb[0].mxu0 %vm72_vm2, %v55_v5 }
 0x103   :  { %v110_v7 = vpop.f32.mrb[0].mxu0 }
 0x104   :  { %v117_v9 = vadd.f32 %v110_v7, %v51_v6  ;;  %v169_v10 = vpop.f32.mrb[1].mxu0 }
 0x105   :  { %v113_v11 = vpop.f32.mrb[2].mxu0 }
 0x106   :  { %120 = vst.msk [vmem:[#allocation2] sm:$0xff] %vm48_vm0, %v117_v9  ;;  %v118_v12 = vadd.f32 %v113_v11, %v52_v8  ;;  %v170_v13 = vpop.f32.mrb[3].mxu0 }
 0x108   :  { %121 = vst.msk [vmem:[#allocation2 + $0x8] sm:$0xff] %vm48_vm0, %v118_v12 }
 0x10d   :  { %v125_v15 = vld [vmem:[#allocation2] sm:$0xff] }
 0x10e   :  { %v134_v16 = vadd.f32 %v159_v14, %v125_v15 }
 0x10f   :  { %v126_v17 = vld [vmem:[#allocation2 + $0x8] sm:$0xff] }
 0x110   :  { %v135_v18 = vadd.f32 %v159_v14, %v126_v17  ;;  %136 = vst.msk [vmem:[#allocation8] sm:$0xff] %vm48_vm0, %v134_v16 }
 0x112   :  { %137 = vst.msk [vmem:[#allocation8 + $0x8] sm:$0xff] %vm48_vm0, %v135_v18 }
 0x113   :  { %237 = shalt.err (!%p234_p6)
}
 0x114   :  { %s238_s17 = scalar_lea.hbm %s337_s3, 256 }
 0x115   :  { %p239_p7 = scmp.ne.s32.totalorder %s337_s3, %s238_s17  ;;  %p242_p8 = scmp.lt.u32.totalorder %s238_s17, %s337_s3 }
 0x117   :  { %p244_p9 = pnand %p242_p8, %p239_p7 }
 0x119   :  { %247 = shalt.err (!%p244_p9)
}
 0x11a   :  { %149 = dma.vmem_to_hbm [thread:$0]  %s144_s14, 256, %s337_s3, [#allocation5], %s255_s22, %s255_s22, %s256_s23  }
 0x11b   :  { %252 = dma.done.wait [#allocation5], 256  }
 0x11c   :  { %253 = vsyncadd [#allocation5], 4294967040 }
 0x11d   :  { %153 = vsyncpa [#allocation4], 1 }
 0x11e   :  { %154 = vsyncpa [#allocation7], 1 }
 0x11f   :  { %155 = vsyncpa [#allocation5], 1 }

</bundles_post_ra>
